<compile_context>
chip_gen: v7x
topology: tpu7x:2x2x1
jax: 0.10.0
libtpu: 0.0.40
codegen_flags: <defaults>
</compile_context>

<pallas_src>
import jax
import jax.numpy as jnp
from jax.experimental import pallas as pl
from jax.experimental.pallas import tpu as pltpu

_VMEM_TILE_BUDGET = 24 * 1024 * 1024   # budget for double-buffered in+out activation tiles
_VMEM_LIMIT_BYTES = 48 * 1024 * 1024   # < v7x 64 MiB physical, > v5e 16 MiB default scoped
_MAX_BT = 8                            # batch rows per grid step (small static unroll)


def _nin_kernel(x_ref, w_ref, b_ref, o_ref):
    # x_ref: (Bt, C_in, thw)   activation tile (input dtype)
    # w_ref: (C_out, C_in)     weight-normed weights (f32, VMEM-resident)
    # b_ref: (C_out, 1)        bias (f32, VMEM-resident)
    # o_ref: (Bt, C_out, thw)  output tile (input dtype)
    w = w_ref[...]
    b = b_ref[...]
    for i in range(x_ref.shape[0]):      # Bt is small & static -> unrolled 2-D matmuls
        acc = jnp.dot(w, x_ref[i], preferred_element_type=jnp.float32)
        o_ref[i] = (acc + b).astype(o_ref.dtype)


def _choose_tiles(B, C_in, C_out, HW, itemsize, hw_tile):
    """Pick (Bt, thw) so each grid step moves a large slab while the
    double-buffered in+out tiles stay inside the VMEM budget, and the grid
    has at least 2 steps (v7x dual TensorCore)."""
    # ---- lane (H*W) tile: whole row if it is already lane-dense, otherwise a
    #      multiple of 512 so the MXU N dim / output vst stream stay packed and
    #      only the last block is ragged (masked).
    if HW <= hw_tile:
        if HW % 128 == 0 or HW <= 512:
            thw = HW                                   # full-dim block (always legal)
        else:
            thw = (HW // 512) * 512
    else:
        if hw_tile >= 512:
            thw = (hw_tile // 512) * 512
        else:
            thw = max(128, (hw_tile // 128) * 128)     # guard: never 0

    # Shrink thw if even a single batch-row tile pair would blow the budget.
    row_lane_bytes = 2 * (C_in + C_out) * itemsize     # per unit of thw, double-buffered in+out
    if row_lane_bytes * thw > _VMEM_TILE_BUDGET:
        max_thw = _VMEM_TILE_BUDGET // row_lane_bytes
        thw = max(128, (max_thw // 128) * 128)
    thw = min(thw, HW)                                 # full-dim fallback stays legal
    n_hw = pl.cdiv(HW, thw)

    # ---- batch tile: amortize per-step overhead within the VMEM budget ----
    row_bytes = row_lane_bytes * thw
    Bt = int(max(1, min(B, _MAX_BT, _VMEM_TILE_BUDGET // max(1, row_bytes))))
    while B % Bt != 0:                                 # keep leading-dim blocks un-ragged
        Bt -= 1
    n_b = B // Bt

    # ---- guarantee >= 2 grid steps so both v7x TensorCores get work ----
    if n_b * n_hw < 2:
        if B >= 2:
            Bt = max(1, B // 2)
            while B % Bt != 0:
                Bt -= 1
            n_b = B // Bt
        elif thw >= 256 and thw % 256 == 0:
            thw //= 2
            n_hw = pl.cdiv(HW, thw)

    return Bt, thw, n_b, n_hw


def nin_matmul_nchw(x3, w_eff, bias, *, hw_tile=8192):
    """x3: (B, C_in, HW), w_eff: (C_out, C_in), bias: (C_out,) -> (B, C_out, HW)."""
    B, C_in, HW = x3.shape
    C_out = w_eff.shape[0]
    itemsize = x3.dtype.itemsize

    Bt, thw, n_b, n_hw = _choose_tiles(B, C_in, C_out, HW, itemsize, hw_tile)

    w2d = w_eff.astype(jnp.float32)
    b2d = bias.astype(jnp.float32).reshape(C_out, 1)

    cost = pl.CostEstimate(
        flops=2 * B * HW * C_in * C_out,
        transcendentals=0,
        bytes_accessed=(B * C_in * HW * itemsize          # activations in
                        + C_out * C_in * 4 + C_out * 4    # weights + bias
                        + B * C_out * HW * itemsize),     # output
    )

    return pl.pallas_call(
        _nin_kernel,
        out_shape=jax.ShapeDtypeStruct((B, C_out, HW), x3.dtype),
        grid_spec=pltpu.PrefetchScalarGridSpec(
            num_scalar_prefetch=0,
            grid=(n_b, n_hw),
            in_specs=[
                pl.BlockSpec((Bt, C_in, thw), lambda bi, j: (bi, 0, j)),   # activation tile
                pl.BlockSpec((C_out, C_in), lambda bi, j: (0, 0)),         # full weight (resident)
                pl.BlockSpec((C_out, 1), lambda bi, j: (0, 0)),            # bias (resident)
            ],
            out_specs=pl.BlockSpec((Bt, C_out, thw), lambda bi, j: (bi, 0, j)),
        ),
        compiler_params=pltpu.CompilerParams(
            dimension_semantics=("parallel", "parallel"),
            vmem_limit_bytes=_VMEM_LIMIT_BYTES,
        ),
        cost_estimate=cost,
    )(x3, w2d, b2d)


def nin_forward(x, v, g, bias):
    """x: (B, C_in, H, W) NCHW.  v: (C_out, C_in), g: (C_out, 1), bias: (C_out,)."""
    B, C_in, H, W = x.shape
    C_out = v.shape[0]

    # weight_norm(dim=0): W_eff[i, :] = g[i] * v[i, :] / ||v[i, :]||_2
    # (no eps, matching PyTorch weight_norm; an all-zero v row would NaN there too)
    row_norm = jnp.sqrt(jnp.sum(v.astype(jnp.float32) ** 2, axis=1, keepdims=True))
    w_eff = (g * v / row_norm).astype(jnp.float32)          # (C_out, C_in)

    # NCHW with flattened spatial axis: contiguous reshape, zero data movement.
    x3 = x.reshape(B, C_in, H * W)
    out3 = nin_matmul_nchw(x3, w_eff, bias)                 # (B, C_out, H*W)
    return out3.reshape(B, C_out, H, W)


if __name__ == "__main__":
    B, C_in, H, W = 2, 4, 16, 16
    dim_out = 32

    key = jax.random.PRNGKey(0)
    kx, kv, kb = jax.random.split(key, 3)

    x = jax.random.normal(kx, (B, C_in, H, W), dtype=jnp.float32)
    v = jax.random.normal(kv, (dim_out, C_in), dtype=jnp.float32) * 0.1
    # PyTorch weight_norm init sets g = ||v||_row; keep it deterministic.
    g = jnp.sqrt(jnp.sum(v * v, axis=1, keepdims=True))
    bias = jax.random.normal(kb, (dim_out,), dtype=jnp.float32) * 0.01

    out = jax.jit(nin_forward)(x, v, g, bias)
    jax.block_until_ready(out)

    # Pure-JAX high-precision reference. The kernel now contracts in f32 with
    # f32 accumulation, so the tolerance tightens to 5e-3 (covers the MXU's
    # default f32 matmul pass structure with margin).
    w_eff = g * v / jnp.sqrt(jnp.sum(v * v, axis=1, keepdims=True))
    ref = jnp.einsum("bchw,oc->bohw", x, w_eff,
                     precision=jax.lax.Precision.HIGHEST) + bias[None, :, None, None]
    assert out.shape == (B, dim_out, H, W)
    err = float(jnp.max(jnp.abs(out - ref)))
    assert jnp.allclose(out, ref, atol=5e-3, rtol=5e-3), err

    print("KERNEL_OK")
</pallas_src>

<mosaic_0001>
module attributes {stable_mosaic.version = 11 : i64} {
  func.func @_nin_kernel(%arg0: i32, %arg1: i32, %arg2: memref<1x4x256xf32, #tpu.memory_space<vmem>>, %arg3: memref<32x4xf32, #tpu.memory_space<vmem>>, %arg4: memref<32x1xf32, #tpu.memory_space<vmem>>, %arg5: memref<1x32x256xf32, #tpu.memory_space<vmem>>) attributes {dimension_semantics = [#tpu.dimension_semantics<parallel>, #tpu.dimension_semantics<parallel>], iteration_bounds = array<i64: 2, 1>, scalar_prefetch = 0 : i64, scratch_operands = 0 : i64, tpu.core_type = #tpu.core_type<tc>, window_params = [{transform_indices = @transform_0, window_bounds = array<i64: 1, 4, 256>}, {pipeline_mode = #tpu.pipeline_mode<synchronous>, transform_indices = @transform_1, window_bounds = array<i64: 32, 4>}, {pipeline_mode = #tpu.pipeline_mode<synchronous>, transform_indices = @transform_2, window_bounds = array<i64: 32, 1>}, {transform_indices = @transform_3, window_bounds = array<i64: 1, 32, 256>}]} {
    %c0 = arith.constant 0 : index
    %c0_0 = arith.constant 0 : index
    %0 = vector.load %arg3[%c0, %c0_0] : memref<32x4xf32, #tpu.memory_space<vmem>>, vector<32x4xf32>
    %c0_1 = arith.constant 0 : index
    %c0_2 = arith.constant 0 : index
    %1 = vector.load %arg4[%c0_1, %c0_2] : memref<32x1xf32, #tpu.memory_space<vmem>>, vector<32x1xf32>
    %c0_3 = arith.constant 0 : index
    %c0_4 = arith.constant 0 : index
    %c0_5 = arith.constant 0 : index
    %2 = vector.load %arg2[%c0_3, %c0_4, %c0_5] : memref<1x4x256xf32, #tpu.memory_space<vmem>>, vector<1x4x256xf32>
    %3 = vector.shape_cast %2 : vector<1x4x256xf32> to vector<4x256xf32>
    %cst = arith.constant dense<0.000000e+00> : vector<32x256xf32>
    %4 = tpu.matmul %0, %3, %cst {dimension_numbers = #tpu.dot_dimension_numbers<[1], [0], [0], [1], [0, 0, 1, 1], [], []>} : vector<32x4xf32>, vector<4x256xf32>, vector<32x256xf32> -> vector<32x256xf32>
    %5 = vector.broadcast %1 : vector<32x1xf32> to vector<32x256xf32>
    %6 = arith.addf %4, %5 : vector<32x256xf32>
    %c0_6 = arith.constant 0 : index
    %c0_7 = arith.constant 0 : index
    %c0_8 = arith.constant 0 : index
    %7 = vector.load %arg5[%c0_6, %c0_7, %c0_8] : memref<1x32x256xf32, #tpu.memory_space<vmem>>, vector<1x32x256xf32>
    %8 = vector.shape_cast %7 : vector<1x32x256xf32> to vector<32x256xf32>
    %9 = vector.shape_cast %6 : vector<32x256xf32> to vector<1x32x256xf32>
    tpu.vector_store %arg5[%c0_6, %c0_7, %c0_8], %9 {strides = array<i32>} : memref<1x32x256xf32, #tpu.memory_space<vmem>>, vector<1x32x256xf32>,
    return
  }
  func.func @transform_0(%arg0: i32, %arg1: i32) -> (i32, i32, i32) {
    %c0_i32 = arith.constant 0 : i32
    %c0_i32_0 = arith.constant 0 : i32
    return %arg0, %c0_i32, %arg1 : i32, i32, i32
  }
  func.func @transform_1(%arg0: i32, %arg1: i32) -> (i32, i32) {
    %c0_i32 = arith.constant 0 : i32
    %c0_i32_0 = arith.constant 0 : i32
    %c0_i32_1 = arith.constant 0 : i32
    return %c0_i32, %c0_i32_0 : i32, i32
  }
  func.func @transform_2(%arg0: i32, %arg1: i32) -> (i32, i32) {
    %c0_i32 = arith.constant 0 : i32
    %c0_i32_0 = arith.constant 0 : i32
    %c0_i32_1 = arith.constant 0 : i32
    return %c0_i32, %c0_i32_0 : i32, i32
  }
  func.func @transform_3(%arg0: i32, %arg1: i32) -> (i32, i32, i32) {
    %c0_i32 = arith.constant 0 : i32
    %c0_i32_0 = arith.constant 0 : i32
    return %arg0, %c0_i32, %arg1 : i32, i32, i32
  }
}

</mosaic_0001>

<bundles_post_ra>
// kernel: nin_forward.1
= control target key start
LH: loop header
LB: loop body
LE: loop exit
PB: predicated region body
PF: predicated region fallthrough
CT: control target
= control target key end

     0   :  { %s539_s12 = smov 0   ;;  %s541_s13 = smov 0   ;;  %s600_s0 = inlined_call_operand.vmem [shape: f32[2,4,256], index: 0, kind: input, shape index: {}]   ;;  %s601_s1 = inlined_call_operand.vmem [shape: f32[32,4], index: 1, kind: input, shape index: {}]   ;;  %s602_s2 = inlined_call_operand.vmem [shape: f32[32,1], index: 2, kind: input, shape index: {}]   ;;  %s603_s3 = inlined_call_operand.vmem [shape: f32[2,32,256], index: 3, kind: output, shape index: {}]  }
   0x1   :  { %s543_s14 = smov 0  }
   0x2 LB: > { %s25_s15 = sadd.s32 1, %s511_s13  ;;  %p447_p0 = scmp.ge.s32.totalorder %s515_s14, 1  ;;  %s515_s14 = sphi %s543_s14, %s13_s14   ;;  %s511_s13 = sphi %s541_s13, %s605_s13   ;;  %s507_s12 = sphi %s539_s12, %s604_s12  }
   0x3   : > { %p27_p1 = scmp.ge.s32.totalorder %s25_s15, 2  ;;  %p158_p2 = scmp.lt.s32.totalorder %s515_s14, 3 }
   0x5   : > { %s607_s15 = smov (%p27_p1, %s25_s15), 0  ;;  %p159_p3 = pnand %p447_p0, %p158_p2 }
   0x6   : > { %p191_p4 = scmp.lt.s32.totalorder (!%p159_p3), %s507_s12, 1  ;;  %v517_v0 = vmov (!%p159_p3), 0.0   ;;  %v216_v1 = vld [vmem:[%s602_s2 + $0x10] sm:$0xff] (!%p159_p3)  ;;  %v518_v2 = vmov (!%p159_p3), 0   ;;  %v214_v3 = vld [vmem:[%s602_s2] sm:$0xff] (!%p159_p3)  ;;  %v217_v4 = vld [vmem:[%s602_s2 + $0x18] sm:$0xff] (!%p159_p3) }
   0x7   : > { %162 = sbr.rel (%p159_p3) target bundleno = 242 (0xf2), region = 32  ;;  %323 = vmatprep.mubr.f32.mxu0 (!%p159_p3), %v517_v0  ;;  %335 = vmatprep.mubr.f32.mxu1 (!%p159_p3), %v517_v0  ;;  %v215_v5 = vld [vmem:[%s602_s2 + $0x8] sm:$0xff] (!%p159_p3)  ;;  %vm254_vm0 = vcmask (!%p159_p3), 1043456   ;;  %v210_v8 = vld [vmem:[%s601_s1] sm:$0xff] (!%p159_p3)  ;;  %vm241_vm1 = vcmask (!%p159_p3), 31744   ;;  %v212_v9 = vld [vmem:[%s601_s1 + $0x10] sm:$0xff] (!%p159_p3) }
   0x8   : > { %491 = vset.pattern.permute.xlu1 (!%p159_p3), %v518_v2  ;;  %490 = vset.pattern.permute.xlu0 (!%p159_p3), %v518_v2  ;;  %v211_v10 = vld [vmem:[%s601_s1 + $0x8] sm:$0xff] (!%p159_p3)  ;;  %v213_v11 = vld [vmem:[%s601_s1 + $0x18] sm:$0xff] (!%p159_p3) }
   0x9   : > { %231 = vperm.xlu1 (!%p159_p3), %491, %v216_v1   ;;  %221 = vperm.xlu0 (!%p159_p3), %490, %v214_v3  }
   0xd   : > { %236 = vperm.xlu1 (!%p159_p3), %491, %v217_v4   ;;  %226 = vperm.xlu0 (!%p159_p3), %490, %v215_v5  }
   0xe   : > { %s609_s12 = smov (!%p191_p4, %s507_s12), 1 }
   0xf   : > { %s460_s20 = sshll.u32 %s609_s12, 3  ;;  %s461_s9 = sshll.u32 %s609_s12, 6 }
  0x10   : > { %s198_s27 = scalar_lea.vmem %s600_s0, %s460_s20  ;;  %s208_s16 = scalar_lea.vmem %s603_s3, %s461_s9 }
  0x11   : > { %v218_v6 = vld [vmem:[%s198_s27] sm:$0xff] }
  0x12   : > { %v240_v7 = vcombine.high %v218_v6, %v218_v6 }
  0x14   : > { %452 = vmatprep.subr.msk.mxu0 %vm254_vm0, %v240_v7  ;;  %462 = vmatprep.subr.msk.mxu1 %vm254_vm0, %v240_v7 }
  0x15   : > { %453 = vmatpush1.msk.msra.mxu0 %vm254_vm0, %v218_v6  ;;  %463 = vmatpush1.msk.msra.mxu1 %vm254_vm0, %v218_v6 }
  0x16   : > { %454 = vmatmul.mubr.msk.f32.vlgmr.msra.gmra.mrb[0].mxu0 %vm241_vm1, %v210_v8  ;;  %456 = vmatmul.mubr.msk.f32.vlgmr.msra.gmra.mrb[0].mxu1 %vm241_vm1, %v212_v9 }
  0x17   : > { %329 = vmatprep.mubr.f32.mxu0 %v517_v0  ;;  %341 = vmatprep.mubr.f32.mxu1 %v517_v0 }
  0x1a   : > { %455 = vmatmul.mubr.msk.f32.gmra.mrb[2].mxu0 %vm241_vm1, %v211_v10  ;;  %457 = vmatmul.mubr.msk.f32.gmra.mrb[2].mxu1 %vm241_vm1, %v213_v11 }
  0x88   : > { %v232_v12 = vpop.permute.xlu1 %231  ;;  %v222_v13 = vpop.permute.xlu0 %221 }
  0x8c   : > { %v237_v22 = vpop.permute.xlu1 %236  ;;  %v227_v23 = vpop.permute.xlu0 %226 }
  0xe9   : > { %v325_v14 = vpop.f32.mrb[0].mxu0  ;;  %v337_v15 = vpop.f32.mrb[0].mxu1 }
  0xea   : > { %v326_v16 = vadd.f32 %v325_v14, %v222_v13  ;;  %v338_v17 = vadd.f32 %v337_v15, %v232_v12  ;;  %v327_v18 = vpop.f32.mrb[1].mxu0  ;;  %v339_v19 = vpop.f32.mrb[1].mxu1 }
  0xeb   : > { %v328_v20 = vadd.f32 %v327_v18, %v222_v13  ;;  %v340_v21 = vadd.f32 %v339_v19, %v232_v12 }
  0xec   : > { %348 = vst [vmem:[%s208_s16] sm:$0xff] %v326_v16  ;;  %352 = vst [vmem:[%s208_s16 + $0x20] sm:$0xff] %v338_v17 }
  0xed   : > { %349 = vst [vmem:[%s208_s16 + $0x8] sm:$0xff] %v328_v20  ;;  %353 = vst [vmem:[%s208_s16 + $0x28] sm:$0xff] %v340_v21  ;;  %v331_v24 = vpop.f32.mrb[2].mxu0  ;;  %v343_v25 = vpop.f32.mrb[2].mxu1 }
  0xee   : > { %v332_v26 = vadd.f32 %v331_v24, %v227_v23  ;;  %v344_v27 = vadd.f32 %v343_v25, %v237_v22  ;;  %v333_v28 = vpop.f32.mrb[3].mxu0  ;;  %v345_v29 = vpop.f32.mrb[3].mxu1 }
  0xef   : > { %v334_v30 = vadd.f32 %v333_v28, %v227_v23  ;;  %v346_v31 = vadd.f32 %v345_v29, %v237_v22 }
  0xf0   : > { %350 = vst [vmem:[%s208_s16 + $0x10] sm:$0xff] %v332_v26  ;;  %354 = vst [vmem:[%s208_s16 + $0x30] sm:$0xff] %v344_v27 }
  0xf1   : > { %351 = vst [vmem:[%s208_s16 + $0x18] sm:$0xff] %v334_v30  ;;  %355 = vst [vmem:[%s208_s16 + $0x38] sm:$0xff] %v346_v31 }
  0xf2 PF: > { %s13_s14 = sadd.s32 1, %s515_s14   ;;  %s604_s12 = smov %s511_s13 }
  0xf3   : > { %p10_p5 = scmp.ge.s32.totalorder %s13_s14, 4   ;;  %s605_s13 = smov %s607_s15 }
  0xf5   :  { %12 = sbr.rel (!%p10_p5) target bundleno = 2 (0x2), region = 62 }

</bundles_post_ra>
